<compile_context>
chip_gen: v6e
topology: v6e:2x2x1
jax: 0.10.0
libtpu: 0.0.40
codegen_flags: <defaults>
</compile_context>

<pallas_src>
import jax
import jax.numpy as jnp
from jax import lax
from jax.experimental import pallas as pl
from jax.experimental.pallas import tpu as pltpu

# TODO(synk): the original Model builds encoder/decoders from a config dict via
# get_body/get_heads (not provided); we fix a concrete two-task configuration.
TASKS = {"sentiment": 8, "topic": 16}

LANE = 128
SUBLANE = 8


def _round_up(x, m):
    return (x + m - 1) // m * m


def _pick_tile(dim, preferred, multiple):
    """Largest tile <= preferred that divides `dim` and is a multiple of
    `multiple`; falls back to the full dim (always a legal single block)."""
    if dim <= preferred:
        return dim
    t = (preferred // multiple) * multiple
    while t >= multiple:
        if dim % t == 0:
            return t
        t -= multiple
    return dim


def _vmem_limit_bytes():
    """Per-generation scoped VMEM budget (~85% of physical, capped)."""
    cap = 64 * 1024 * 1024
    try:
        cap = int(pltpu.get_tpu_info().vmem_capacity_bytes)
    except Exception:
        pass
    return max(32 * 1024 * 1024, min(int(cap * 0.85), 100 * 1024 * 1024))


def _fused_kernel(emb_ref, len_ref, w_enc_ref, b_enc_ref, w_head_ref, b_head_ref,
                  out_ref, acc_ref):
    si = pl.program_id(1)

    tb, ts, ep = emb_ref.shape
    hp = acc_ref.shape[1]
    m = tb * ts

    @pl.when(si == 0)
    def _init():
        acc_ref[...] = jnp.zeros_like(acc_ref)

    # --- encoder: single flattened (M, Ep) @ (Ep, Hp) bf16 MXU matmul --------
    # (ts is always a multiple of 8, so collapsing the leading dims is a
    #  layout-free reshape.)
    emb = emb_ref[...].reshape(m, ep)                              # bf16
    h = jnp.dot(emb, w_enc_ref[...], preferred_element_type=jnp.float32)
    h = jnp.maximum(h + b_enc_ref[...], 0.0)                       # (M, Hp) f32

    # --- length-masked sum over this seq tile -------------------------------
    # Row r of the tile is (batch_in_tile = r // ts, seq = si*ts + r % ts);
    # the 0/1 selector is built with adds/compares only (VPU), and the
    # contraction runs as a bf16 MXU matmul with f32 accumulation (the
    # selector values 0/1 are exact in bf16).
    lens = len_ref[...]                                            # (tb, 1) int32
    col = lax.broadcasted_iota(jnp.int32, (tb, m), 1)
    row = lax.broadcasted_iota(jnp.int32, (tb, m), 0)
    lo = row * ts
    hi = lo + jnp.clip(lens - si * ts, 0, ts)                      # (tb, M)
    sel = jnp.logical_and(col >= lo, col < hi).astype(jnp.bfloat16)
    acc_ref[...] += jnp.dot(sel, h.astype(jnp.bfloat16),
                            preferred_element_type=jnp.float32)

    # --- finalize: exact mean pooling + fused lane-dense head matmul ---------
    @pl.when(si == pl.num_programs(1) - 1)
    def _finalize():
        denom = jnp.maximum(lens.astype(jnp.float32), 1.0)         # (tb, 1)
        pooled = acc_ref[...] / denom                              # exact divide
        out_ref[...] = (jnp.dot(pooled.astype(jnp.bfloat16), w_head_ref[...],
                                preferred_element_type=jnp.float32)
                        + b_head_ref[...])


def model_forward(x_tokens, text_len, params, *, tb=None, ts=None):
    """x_tokens: (B, S) int32, text_len: (B,) int32 -> {task: (B, C_task) f32}."""
    B, S = x_tokens.shape
    table = params["embedding"]
    w_enc = params["w_enc"]
    V, E = table.shape
    H = w_enc.shape[1]

    # Lane-dense padded feature dims (zero padding -> exact semantics).
    ep = max(_round_up(E, LANE), LANE)
    hp = max(_round_up(H, LANE), LANE)
    c_sizes = list(TASKS.values())
    c_tot = sum(c_sizes)
    cp = max(_round_up(c_tot, LANE), LANE)

    # Pad the sequence to a sublane multiple so (tb, ts, Ep) blocks tile cleanly;
    # padded positions are masked out by text_len.
    sp = _round_up(S, SUBLANE)

    # --- tile sizes -----------------------------------------------------------
    if tb is None:
        pref_b = 64                                   # fills MXU rows for pooling/head
        if B >= 2 * SUBLANE:
            pref_b = min(pref_b, max(SUBLANE, B // 2))  # >=2 batch blocks (v7x dual-TC)
        tb = _pick_tile(B, pref_b, SUBLANE)
    if ts is None:
        # Keep M*max(Ep,Hp)*4 bytes of live f32 intermediates around ~8 MiB.
        row_budget = max(512, min(8192, (8 * 1024 * 1024) // (max(ep, hp) * 4)))
        ts = _pick_tile(sp, max(SUBLANE, min(512, row_budget // tb)), SUBLANE)
    nb, ns = B // tb, sp // ts
    m = tb * ts
    assert B % tb == 0 and sp % ts == 0, (B, tb, sp, ts)

    vmem_limit = _vmem_limit_bytes()
    # Explicit guard against silent VMEM explosion (review correctness concern).
    est = (2 * tb * ts * ep * 2                      # double-buffered emb blocks (bf16)
           + 2 * tb * 4                              # lens blocks
           + (ep * hp * 2 + hp * 4 + hp * cp * 2 + cp * 4)   # single-buffered weights
           + 2 * tb * cp * 4                         # output blocks
           + tb * hp * 4                             # accumulator scratch
           + m * hp * 6 + m * ep * 2 + m * tb * 2)   # live intermediates (h, emb, sel)
    assert est <= vmem_limit, (
        f"tile sizes tb={tb}, ts={ts} need ~{est >> 20} MiB VMEM "
        f"(> {vmem_limit >> 20} MiB available); pass smaller tb/ts")

    # --- wrapper-side embedding gather (replaces in-kernel one-hot @ table) ---
    table_p = jnp.zeros((V, ep), jnp.bfloat16).at[:, :E].set(table.astype(jnp.bfloat16))
    tok = x_tokens.astype(jnp.int32)
    if sp != S:
        tok = jnp.pad(tok, ((0, 0), (0, sp - S)))    # pad token id 0; masked by lens
    emb = jnp.take(table_p, tok, axis=0, mode="clip")  # (B, Sp, Ep) bf16 XLA gather

    # bf16 MXU weight operands, f32 biases (wrapper-level plumbing only).
    w_enc_p = jnp.zeros((ep, hp), jnp.bfloat16).at[:E, :H].set(w_enc.astype(jnp.bfloat16))
    b_enc_p = jnp.zeros((1, hp), jnp.float32).at[:, :H].set(params["b_enc"].astype(jnp.float32))
    w_heads = jnp.concatenate([params[f"w_{t}"] for t in TASKS], axis=1)
    b_heads = jnp.concatenate([params[f"b_{t}"] for t in TASKS], axis=1)
    w_head_p = jnp.zeros((hp, cp), jnp.bfloat16).at[:H, :c_tot].set(w_heads.astype(jnp.bfloat16))
    b_head_p = jnp.zeros((1, cp), jnp.float32).at[:, :c_tot].set(b_heads.astype(jnp.float32))

    # text_len is assumed <= S (module semantics); clip so padded positions
    # never contribute.
    lens2d = jnp.minimum(text_len.astype(jnp.int32), S).reshape(B, 1)

    def build(weight_kwargs):
        def inv(shape):
            return pl.BlockSpec(shape, lambda bi, si: (0, 0), **weight_kwargs)

        grid_spec = pltpu.PrefetchScalarGridSpec(
            num_scalar_prefetch=0,
            grid=(nb, ns),
            in_specs=[
                pl.BlockSpec((tb, ts, ep), lambda bi, si: (bi, si, 0)),
                pl.BlockSpec((tb, 1), lambda bi, si: (bi, 0)),
                inv((ep, hp)),
                inv((1, hp)),
                inv((hp, cp)),
                inv((1, cp)),
            ],
            out_specs=pl.BlockSpec((tb, cp), lambda bi, si: (bi, 0)),
            scratch_shapes=[pltpu.VMEM((tb, hp), jnp.float32)],
        )
        return pl.pallas_call(
            _fused_kernel,
            out_shape=jax.ShapeDtypeStruct((B, cp), jnp.float32),
            grid_spec=grid_spec,
            compiler_params=pltpu.CompilerParams(
                dimension_semantics=("parallel", "arbitrary"),
                vmem_limit_bytes=vmem_limit,
            ),
        )

    # Grid-invariant weights: request single buffering (index_map is constant,
    # so double buffering only doubles VMEM footprint — matters most on v7x's
    # 64 MiB VMEM).  Fall back to default buffering if unsupported.
    variants = []
    if hasattr(pl, "Buffered"):
        variants.append({"pipeline_mode": pl.Buffered(1)})
    variants.append({})

    out_slab, err = None, None
    for wk in variants:
        try:
            out_slab = jax.block_until_ready(
                build(wk)(emb, lens2d, w_enc_p, b_enc_p, w_head_p, b_head_p))
            break
        except Exception as e:      # pragma: no cover - older Pallas without Buffered(1)
            err = e
    if out_slab is None:
        raise err

    outs = {}
    off = 0
    for task, c in TASKS.items():
        outs[task] = out_slab[:, off:off + c]
        off += c
    return outs


def init_params(key, vocab, embed_dim, hidden_dim):
    ks = jax.random.split(key, 6)
    return {
        "embedding": 0.02 * jax.random.normal(ks[0], (vocab, embed_dim), jnp.float32),
        "w_enc": 0.1 * jax.random.normal(ks[1], (embed_dim, hidden_dim), jnp.float32),
        "b_enc": jnp.zeros((1, hidden_dim), jnp.float32),
        "w_sentiment": 0.1 * jax.random.normal(
            ks[2], (hidden_dim, TASKS["sentiment"]), jnp.float32),
        "b_sentiment": jnp.zeros((1, TASKS["sentiment"]), jnp.float32),
        "w_topic": 0.1 * jax.random.normal(
            ks[3], (hidden_dim, TASKS["topic"]), jnp.float32),
        "b_topic": jnp.zeros((1, TASKS["topic"]), jnp.float32),
    }


def _reference(x_tokens, text_len, params):
    emb = params["embedding"][x_tokens]                               # (B, S, E)
    h = jnp.maximum(
        jnp.einsum("bse,eh->bsh", emb, params["w_enc"]) + params["b_enc"][None],
        0.0)
    mask = (jnp.arange(x_tokens.shape[1])[None, :]
            < text_len[:, None]).astype(jnp.float32)
    denom = jnp.maximum(text_len.astype(jnp.float32), 1.0)[:, None]
    pooled = jnp.einsum("bs,bsh->bh", mask, h) / denom
    return {t: pooled @ params[f"w_{t}"] + params[f"b_{t}"] for t in TASKS}


if __name__ == "__main__":
    B, S, VOCAB, E, H = 2, 8, 64, 32, 32

    key = jax.random.PRNGKey(0)
    k_params, k_tokens = jax.random.split(key)

    params = init_params(k_params, VOCAB, E, H)
    x = jax.random.randint(k_tokens, (B, S), 0, VOCAB, dtype=jnp.int32)
    text_len = jnp.array([5, 8], dtype=jnp.int32)

    out = model_forward(x, text_len, params)
    ref = _reference(x, text_len, params)
    for task, c in TASKS.items():
        val = jax.block_until_ready(out[task])
        assert val.shape == (B, c), (task, val.shape)
        assert bool(jnp.allclose(val, ref[task], atol=1e-2, rtol=1e-1)), task

    print("KERNEL_OK")
</pallas_src>

<mosaic_0001>
module attributes {stable_mosaic.version = 11 : i64} {
  func.func @_fused_kernel(%arg0: i32, %arg1: i32, %arg2: memref<2x8x128xbf16, #tpu.memory_space<vmem>>, %arg3: memref<2x1xi32, #tpu.memory_space<vmem>>, %arg4: memref<128x128xbf16, #tpu.memory_space<vmem>>, %arg5: memref<1x128xf32, #tpu.memory_space<vmem>>, %arg6: memref<128x128xbf16, #tpu.memory_space<vmem>>, %arg7: memref<1x128xf32, #tpu.memory_space<vmem>>, %arg8: memref<2x128xf32, #tpu.memory_space<vmem>>, %arg9: memref<2x128xf32, #tpu.memory_space<vmem>>) attributes {dimension_semantics = [#tpu.dimension_semantics<parallel>, #tpu.dimension_semantics<arbitrary>], iteration_bounds = array<i64: 1, 1>, scalar_prefetch = 0 : i64, scratch_operands = 1 : i64, tpu.core_type = #tpu.core_type<tc>, window_params = [{transform_indices = @transform_0, window_bounds = array<i64: 2, 8, 128>}, {transform_indices = @transform_1, window_bounds = array<i64: 2, 1>}, {pipeline_mode = #tpu.pipeline_mode<synchronous>, transform_indices = @transform_2, window_bounds = array<i64: 128, 128>}, {pipeline_mode = #tpu.pipeline_mode<synchronous>, transform_indices = @transform_3, window_bounds = array<i64: 1, 128>}, {pipeline_mode = #tpu.pipeline_mode<synchronous>, transform_indices = @transform_4, window_bounds = array<i64: 128, 128>}, {pipeline_mode = #tpu.pipeline_mode<synchronous>, transform_indices = @transform_5, window_bounds = array<i64: 1, 128>}, {transform_indices = @transform_6, window_bounds = array<i64: 2, 128>}]} {
    %c0_i32 = arith.constant 0 : i32
    %0 = arith.cmpi eq, %arg1, %c0_i32 : i32
    %1 = arith.extui %0 : i1 to i32
    %c0_i32_0 = arith.constant 0 : i32
    %2 = arith.cmpi ne, %1, %c0_i32_0 : i32
    scf.if %2 {
      %cst_20 = arith.constant 0.000000e+00 : f32
      %40 = vector.broadcast %cst_20 : f32 to vector<2x128xf32>
      %c0_21 = arith.constant 0 : index
      %c0_22 = arith.constant 0 : index
      %41 = vector.load %arg9[%c0_21, %c0_22] : memref<2x128xf32, #tpu.memory_space<vmem>>, vector<2x128xf32>
      tpu.vector_store %arg9[%c0_21, %c0_22], %40 {strides = array<i32>} : memref<2x128xf32, #tpu.memory_space<vmem>>, vector<2x128xf32>,
    } else {
    }
    %c0 = arith.constant 0 : index
    %c0_1 = arith.constant 0 : index
    %c0_2 = arith.constant 0 : index
    %3 = vector.load %arg2[%c0, %c0_1, %c0_2] : memref<2x8x128xbf16, #tpu.memory_space<vmem>>, vector<2x8x128xbf16>
    %4 = vector.shape_cast %3 : vector<2x8x128xbf16> to vector<16x128xbf16>
    %c0_3 = arith.constant 0 : index
    %c0_4 = arith.constant 0 : index
    %5 = vector.load %arg4[%c0_3, %c0_4] : memref<128x128xbf16, #tpu.memory_space<vmem>>, vector<128x128xbf16>
    %cst = arith.constant dense<0.000000e+00> : vector<16x128xf32>
    %6 = tpu.matmul %4, %5, %cst {dimension_numbers = #tpu.dot_dimension_numbers<[1], [0], [0], [1], [0, 0, 1, 1], [], []>} : vector<16x128xbf16>, vector<128x128xbf16>, vector<16x128xf32> -> vector<16x128xf32>
    %c0_5 = arith.constant 0 : index
    %c0_6 = arith.constant 0 : index
    %7 = vector.load %arg5[%c0_5, %c0_6] : memref<1x128xf32, #tpu.memory_space<vmem>>, vector<1x128xf32>
    %8 = vector.broadcast %7 : vector<1x128xf32> to vector<16x128xf32>
    %9 = arith.addf %6, %8 : vector<16x128xf32>
    %cst_7 = arith.constant 0.000000e+00 : f32
    %10 = vector.broadcast %cst_7 : f32 to vector<16x128xf32>
    %11 = arith.maximumf %9, %10 : vector<16x128xf32>
    %c0_8 = arith.constant 0 : index
    %c0_9 = arith.constant 0 : index
    %12 = vector.load %arg3[%c0_8, %c0_9] : memref<2x1xi32, #tpu.memory_space<vmem>>, vector<2x1xi32>
    %13 = tpu.iota {dimensions = array<i32: 1>} : vector<2x16xi32>
    %14 = tpu.iota {dimensions = array<i32: 0>} : vector<2x16xi32>
    %c8_i32 = arith.constant 8 : i32
    %15 = vector.broadcast %c8_i32 : i32 to vector<2x16xi32>
    %16 = arith.muli %14, %15 : vector<2x16xi32>
    %c8_i32_10 = arith.constant 8 : i32
    %17 = arith.muli %arg1, %c8_i32_10 : i32
    %18 = vector.broadcast %17 : i32 to vector<2x1xi32>
    %19 = arith.subi %12, %18 : vector<2x1xi32>
    %c0_i32_11 = arith.constant 0 : i32
    %c8_i32_12 = arith.constant 8 : i32
    %20 = vector.broadcast %c0_i32_11 : i32 to vector<2x1xi32>
    %21 = arith.maxsi %20, %19 : vector<2x1xi32>
    %22 = vector.broadcast %c8_i32_12 : i32 to vector<2x1xi32>
    %23 = arith.minsi %22, %21 : vector<2x1xi32>
    %24 = vector.broadcast %23 : vector<2x1xi32> to vector<2x16xi32>
    %25 = arith.addi %16, %24 : vector<2x16xi32>
    %26 = arith.cmpi sge, %13, %16 : vector<2x16xi32>
    %27 = arith.cmpi slt, %13, %25 : vector<2x16xi32>
    %28 = arith.andi %26, %27 : vector<2x16xi1>
    %29 = arith.extui %28 : vector<2x16xi1> to vector<2x16xi32>
    %30 = arith.sitofp %29 : vector<2x16xi32> to vector<2x16xf32>
    %31 = arith.truncf %30 : vector<2x16xf32> to vector<2x16xbf16>
    %c0_13 = arith.constant 0 : index
    %c0_14 = arith.constant 0 : index
    %32 = vector.load %arg9[%c0_13, %c0_14] : memref<2x128xf32, #tpu.memory_space<vmem>>, vector<2x128xf32>
    %33 = arith.truncf %11 : vector<16x128xf32> to vector<16x128xbf16>
    %cst_15 = arith.constant dense<0.000000e+00> : vector<2x128xf32>
    %34 = tpu.matmul %31, %33, %cst_15 {dimension_numbers = #tpu.dot_dimension_numbers<[1], [0], [0], [1], [0, 0, 1, 1], [], []>} : vector<2x16xbf16>, vector<16x128xbf16>, vector<2x128xf32> -> vector<2x128xf32>
    %35 = arith.addf %32, %34 : vector<2x128xf32>
    %c0_16 = arith.constant 0 : index
    %c0_17 = arith.constant 0 : index
    %36 = vector.load %arg9[%c0_16, %c0_17] : memref<2x128xf32, #tpu.memory_space<vmem>>, vector<2x128xf32>
    tpu.vector_store %arg9[%c0_16, %c0_17], %35 {strides = array<i32>} : memref<2x128xf32, #tpu.memory_space<vmem>>, vector<2x128xf32>,
    %c0_i32_18 = arith.constant 0 : i32
    %37 = arith.cmpi eq, %arg1, %c0_i32_18 : i32
    %38 = arith.extui %37 : i1 to i32
    %c0_i32_19 = arith.constant 0 : i32
    %39 = arith.cmpi ne, %38, %c0_i32_19 : i32
    scf.if %39 {
      %40 = arith.sitofp %12 : vector<2x1xi32> to vector<2x1xf32>
      %cst_20 = arith.constant 1.000000e+00 : f32
      %41 = vector.broadcast %cst_20 : f32 to vector<2x1xf32>
      %42 = arith.maximumf %40, %41 : vector<2x1xf32>
      %c0_21 = arith.constant 0 : index
      %c0_22 = arith.constant 0 : index
      %43 = vector.load %arg9[%c0_21, %c0_22] : memref<2x128xf32, #tpu.memory_space<vmem>>, vector<2x128xf32>
      %44 = vector.broadcast %42 : vector<2x1xf32> to vector<2x128xf32>
      %45 = arith.divf %43, %44 : vector<2x128xf32>
      %46 = arith.truncf %45 : vector<2x128xf32> to vector<2x128xbf16>
      %c0_23 = arith.constant 0 : index
      %c0_24 = arith.constant 0 : index
      %47 = vector.load %arg6[%c0_23, %c0_24] : memref<128x128xbf16, #tpu.memory_space<vmem>>, vector<128x128xbf16>
      %cst_25 = arith.constant dense<0.000000e+00> : vector<2x128xf32>
      %48 = tpu.matmul %46, %47, %cst_25 {dimension_numbers = #tpu.dot_dimension_numbers<[1], [0], [0], [1], [0, 0, 1, 1], [], []>} : vector<2x128xbf16>, vector<128x128xbf16>, vector<2x128xf32> -> vector<2x128xf32>
      %c0_26 = arith.constant 0 : index
      %c0_27 = arith.constant 0 : index
      %49 = vector.load %arg7[%c0_26, %c0_27] : memref<1x128xf32, #tpu.memory_space<vmem>>, vector<1x128xf32>
      %50 = vector.broadcast %49 : vector<1x128xf32> to vector<2x128xf32>
      %51 = arith.addf %48, %50 : vector<2x128xf32>
      %c0_28 = arith.constant 0 : index
      %c0_29 = arith.constant 0 : index
      %52 = vector.load %arg8[%c0_28, %c0_29] : memref<2x128xf32, #tpu.memory_space<vmem>>, vector<2x128xf32>
      tpu.vector_store %arg8[%c0_28, %c0_29], %51 {strides = array<i32>} : memref<2x128xf32, #tpu.memory_space<vmem>>, vector<2x128xf32>,
    } else {
    }
    return
  }
  func.func @transform_0(%arg0: i32, %arg1: i32) -> (i32, i32, i32) {
    %c0_i32 = arith.constant 0 : i32
    %c0_i32_0 = arith.constant 0 : i32
    return %arg0, %arg1, %c0_i32 : i32, i32, i32
  }
  func.func @transform_1(%arg0: i32, %arg1: i32) -> (i32, i32) {
    %c0_i32 = arith.constant 0 : i32
    %c0_i32_0 = arith.constant 0 : i32
    return %arg0, %c0_i32 : i32, i32
  }
  func.func @transform_2(%arg0: i32, %arg1: i32) -> (i32, i32) {
    %c0_i32 = arith.constant 0 : i32
    %c0_i32_0 = arith.constant 0 : i32
    %c0_i32_1 = arith.constant 0 : i32
    return %c0_i32, %c0_i32_0 : i32, i32
  }
  func.func @transform_3(%arg0: i32, %arg1: i32) -> (i32, i32) {
    %c0_i32 = arith.constant 0 : i32
    %c0_i32_0 = arith.constant 0 : i32
    %c0_i32_1 = arith.constant 0 : i32
    return %c0_i32, %c0_i32_0 : i32, i32
  }
  func.func @transform_4(%arg0: i32, %arg1: i32) -> (i32, i32) {
    %c0_i32 = arith.constant 0 : i32
    %c0_i32_0 = arith.constant 0 : i32
    %c0_i32_1 = arith.constant 0 : i32
    return %c0_i32, %c0_i32_0 : i32, i32
  }
  func.func @transform_5(%arg0: i32, %arg1: i32) -> (i32, i32) {
    %c0_i32 = arith.constant 0 : i32
    %c0_i32_0 = arith.constant 0 : i32
    %c0_i32_1 = arith.constant 0 : i32
    return %c0_i32, %c0_i32_0 : i32, i32
  }
  func.func @transform_6(%arg0: i32, %arg1: i32) -> (i32, i32) {
    %c0_i32 = arith.constant 0 : i32
    %c0_i32_0 = arith.constant 0 : i32
    return %arg0, %c0_i32 : i32, i32
  }
}

module attributes {stable_mosaic.version = 11 : i64} {
  func.func @_fused_kernel(%arg0: i32, %arg1: i32, %arg2: memref<2x8x128xbf16, #tpu.memory_space<vmem>>, %arg3: memref<2x1xi32, #tpu.memory_space<vmem>>, %arg4: memref<128x128xbf16, #tpu.memory_space<vmem>>, %arg5: memref<1x128xf32, #tpu.memory_space<vmem>>, %arg6: memref<128x128xbf16, #tpu.memory_space<vmem>>, %arg7: memref<1x128xf32, #tpu.memory_space<vmem>>, %arg8: memref<2x128xf32, #tpu.memory_space<vmem>>, %arg9: memref<2x128xf32, #tpu.memory_space<vmem>>) attributes {dimension_semantics = [#tpu.dimension_semantics<parallel>, #tpu.dimension_semantics<arbitrary>], iteration_bounds = array<i64: 1, 1>, scalar_prefetch = 0 : i64, scratch_operands = 1 : i64, tpu.core_type = #tpu.core_type<tc>, window_params = [{transform_indices = @transform_0, window_bounds = array<i64: 2, 8, 128>}, {transform_indices = @transform_1, window_bounds = array<i64: 2, 1>}, {pipeline_mode = #tpu.pipeline_mode<synchronous>, transform_indices = @transform_2, window_bounds = array<i64: 128, 128>}, {pipeline_mode = #tpu.pipeline_mode<synchronous>, transform_indices = @transform_3, window_bounds = array<i64: 1, 128>}, {pipeline_mode = #tpu.pipeline_mode<synchronous>, transform_indices = @transform_4, window_bounds = array<i64: 128, 128>}, {pipeline_mode = #tpu.pipeline_mode<synchronous>, transform_indices = @transform_5, window_bounds = array<i64: 1, 128>}, {transform_indices = @transform_6, window_bounds = array<i64: 2, 128>}]} {
    %c0_i32 = arith.constant 0 : i32
    %0 = arith.cmpi eq, %arg1, %c0_i32 : i32
    %1 = arith.extui %0 : i1 to i32
    %c0_i32_0 = arith.constant 0 : i32
    %2 = arith.cmpi ne, %1, %c0_i32_0 : i32
    scf.if %2 {
      %cst_20 = arith.constant 0.000000e+00 : f32
      %40 = vector.broadcast %cst_20 : f32 to vector<2x128xf32>
      %c0_21 = arith.constant 0 : index
      %c0_22 = arith.constant 0 : index
      %41 = vector.load %arg9[%c0_21, %c0_22] : memref<2x128xf32, #tpu.memory_space<vmem>>, vector<2x128xf32>
      tpu.vector_store %arg9[%c0_21, %c0_22], %40 {strides = array<i32>} : memref<2x128xf32, #tpu.memory_space<vmem>>, vector<2x128xf32>,
    } else {
    }
    %c0 = arith.constant 0 : index
    %c0_1 = arith.constant 0 : index
    %c0_2 = arith.constant 0 : index
    %3 = vector.load %arg2[%c0, %c0_1, %c0_2] : memref<2x8x128xbf16, #tpu.memory_space<vmem>>, vector<2x8x128xbf16>
    %4 = vector.shape_cast %3 : vector<2x8x128xbf16> to vector<16x128xbf16>
    %c0_3 = arith.constant 0 : index
    %c0_4 = arith.constant 0 : index
    %5 = vector.load %arg4[%c0_3, %c0_4] : memref<128x128xbf16, #tpu.memory_space<vmem>>, vector<128x128xbf16>
    %cst = arith.constant dense<0.000000e+00> : vector<16x128xf32>
    %6 = tpu.matmul %4, %5, %cst {dimension_numbers = #tpu.dot_dimension_numbers<[1], [0], [0], [1], [0, 0, 1, 1], [], []>} : vector<16x128xbf16>, vector<128x128xbf16>, vector<16x128xf32> -> vector<16x128xf32>
    %c0_5 = arith.constant 0 : index
    %c0_6 = arith.constant 0 : index
    %7 = vector.load %arg5[%c0_5, %c0_6] : memref<1x128xf32, #tpu.memory_space<vmem>>, vector<1x128xf32>
    %8 = vector.broadcast %7 : vector<1x128xf32> to vector<16x128xf32>
    %9 = arith.addf %6, %8 : vector<16x128xf32>
    %cst_7 = arith.constant 0.000000e+00 : f32
    %10 = vector.broadcast %cst_7 : f32 to vector<16x128xf32>
    %11 = arith.maximumf %9, %10 : vector<16x128xf32>
    %c0_8 = arith.constant 0 : index
    %c0_9 = arith.constant 0 : index
    %12 = vector.load %arg3[%c0_8, %c0_9] : memref<2x1xi32, #tpu.memory_space<vmem>>, vector<2x1xi32>
    %13 = tpu.iota {dimensions = array<i32: 1>} : vector<2x16xi32>
    %14 = tpu.iota {dimensions = array<i32: 0>} : vector<2x16xi32>
    %c8_i32 = arith.constant 8 : i32
    %15 = vector.broadcast %c8_i32 : i32 to vector<2x16xi32>
    %16 = arith.muli %14, %15 : vector<2x16xi32>
    %c8_i32_10 = arith.constant 8 : i32
    %17 = arith.muli %arg1, %c8_i32_10 : i32
    %18 = vector.broadcast %17 : i32 to vector<2x1xi32>
    %19 = arith.subi %12, %18 : vector<2x1xi32>
    %c0_i32_11 = arith.constant 0 : i32
    %c8_i32_12 = arith.constant 8 : i32
    %20 = vector.broadcast %c0_i32_11 : i32 to vector<2x1xi32>
    %21 = arith.maxsi %20, %19 : vector<2x1xi32>
    %22 = vector.broadcast %c8_i32_12 : i32 to vector<2x1xi32>
    %23 = arith.minsi %22, %21 : vector<2x1xi32>
    %24 = vector.broadcast %23 : vector<2x1xi32> to vector<2x16xi32>
    %25 = arith.addi %16, %24 : vector<2x16xi32>
    %26 = arith.cmpi sge, %13, %16 : vector<2x16xi32>
    %27 = arith.cmpi slt, %13, %25 : vector<2x16xi32>
    %28 = arith.andi %26, %27 : vector<2x16xi1>
    %29 = arith.extui %28 : vector<2x16xi1> to vector<2x16xi32>
    %30 = arith.sitofp %29 : vector<2x16xi32> to vector<2x16xf32>
    %31 = arith.truncf %30 : vector<2x16xf32> to vector<2x16xbf16>
    %c0_13 = arith.constant 0 : index
    %c0_14 = arith.constant 0 : index
    %32 = vector.load %arg9[%c0_13, %c0_14] : memref<2x128xf32, #tpu.memory_space<vmem>>, vector<2x128xf32>
    %33 = arith.truncf %11 : vector<16x128xf32> to vector<16x128xbf16>
    %cst_15 = arith.constant dense<0.000000e+00> : vector<2x128xf32>
    %34 = tpu.matmul %31, %33, %cst_15 {dimension_numbers = #tpu.dot_dimension_numbers<[1], [0], [0], [1], [0, 0, 1, 1], [], []>} : vector<2x16xbf16>, vector<16x128xbf16>, vector<2x128xf32> -> vector<2x128xf32>
    %35 = arith.addf %32, %34 : vector<2x128xf32>
    %c0_16 = arith.constant 0 : index
    %c0_17 = arith.constant 0 : index
    %36 = vector.load %arg9[%c0_16, %c0_17] : memref<2x128xf32, #tpu.memory_space<vmem>>, vector<2x128xf32>
    tpu.vector_store %arg9[%c0_16, %c0_17], %35 {strides = array<i32>} : memref<2x128xf32, #tpu.memory_space<vmem>>, vector<2x128xf32>,
    %c0_i32_18 = arith.constant 0 : i32
    %37 = arith.cmpi eq, %arg1, %c0_i32_18 : i32
    %38 = arith.extui %37 : i1 to i32
    %c0_i32_19 = arith.constant 0 : i32
    %39 = arith.cmpi ne, %38, %c0_i32_19 : i32
    scf.if %39 {
      %40 = arith.sitofp %12 : vector<2x1xi32> to vector<2x1xf32>
      %cst_20 = arith.constant 1.000000e+00 : f32
      %41 = vector.broadcast %cst_20 : f32 to vector<2x1xf32>
      %42 = arith.maximumf %40, %41 : vector<2x1xf32>
      %c0_21 = arith.constant 0 : index
      %c0_22 = arith.constant 0 : index
      %43 = vector.load %arg9[%c0_21, %c0_22] : memref<2x128xf32, #tpu.memory_space<vmem>>, vector<2x128xf32>
      %44 = vector.broadcast %42 : vector<2x1xf32> to vector<2x128xf32>
      %45 = arith.divf %43, %44 : vector<2x128xf32>
      %46 = arith.truncf %45 : vector<2x128xf32> to vector<2x128xbf16>
      %c0_23 = arith.constant 0 : index
      %c0_24 = arith.constant 0 : index
      %47 = vector.load %arg6[%c0_23, %c0_24] : memref<128x128xbf16, #tpu.memory_space<vmem>>, vector<128x128xbf16>
      %cst_25 = arith.constant dense<0.000000e+00> : vector<2x128xf32>
      %48 = tpu.matmul %46, %47, %cst_25 {dimension_numbers = #tpu.dot_dimension_numbers<[1], [0], [0], [1], [0, 0, 1, 1], [], []>} : vector<2x128xbf16>, vector<128x128xbf16>, vector<2x128xf32> -> vector<2x128xf32>
      %c0_26 = arith.constant 0 : index
      %c0_27 = arith.constant 0 : index
      %49 = vector.load %arg7[%c0_26, %c0_27] : memref<1x128xf32, #tpu.memory_space<vmem>>, vector<1x128xf32>
      %50 = vector.broadcast %49 : vector<1x128xf32> to vector<2x128xf32>
      %51 = arith.addf %48, %50 : vector<2x128xf32>
      %c0_28 = arith.constant 0 : index
      %c0_29 = arith.constant 0 : index
      %52 = vector.load %arg8[%c0_28, %c0_29] : memref<2x128xf32, #tpu.memory_space<vmem>>, vector<2x128xf32>
      tpu.vector_store %arg8[%c0_28, %c0_29], %51 {strides = array<i32>} : memref<2x128xf32, #tpu.memory_space<vmem>>, vector<2x128xf32>,
    } else {
    }
    return
  }
  func.func @transform_0(%arg0: i32, %arg1: i32) -> (i32, i32, i32) {
    %c0_i32 = arith.constant 0 : i32
    %c0_i32_0 = arith.constant 0 : i32
    return %arg0, %arg1, %c0_i32 : i32, i32, i32
  }
  func.func @transform_1(%arg0: i32, %arg1: i32) -> (i32, i32) {
    %c0_i32 = arith.constant 0 : i32
    %c0_i32_0 = arith.constant 0 : i32
    return %arg0, %c0_i32 : i32, i32
  }
  func.func @transform_2(%arg0: i32, %arg1: i32) -> (i32, i32) {
    %c0_i32 = arith.constant 0 : i32
    %c0_i32_0 = arith.constant 0 : i32
    %c0_i32_1 = arith.constant 0 : i32
    return %c0_i32, %c0_i32_0 : i32, i32
  }
  func.func @transform_3(%arg0: i32, %arg1: i32) -> (i32, i32) {
    %c0_i32 = arith.constant 0 : i32
    %c0_i32_0 = arith.constant 0 : i32
    %c0_i32_1 = arith.constant 0 : i32
    return %c0_i32, %c0_i32_0 : i32, i32
  }
  func.func @transform_4(%arg0: i32, %arg1: i32) -> (i32, i32) {
    %c0_i32 = arith.constant 0 : i32
    %c0_i32_0 = arith.constant 0 : i32
    %c0_i32_1 = arith.constant 0 : i32
    return %c0_i32, %c0_i32_0 : i32, i32
  }
  func.func @transform_5(%arg0: i32, %arg1: i32) -> (i32, i32) {
    %c0_i32 = arith.constant 0 : i32
    %c0_i32_0 = arith.constant 0 : i32
    %c0_i32_1 = arith.constant 0 : i32
    return %c0_i32, %c0_i32_0 : i32, i32
  }
  func.func @transform_6(%arg0: i32, %arg1: i32) -> (i32, i32) {
    %c0_i32 = arith.constant 0 : i32
    %c0_i32_0 = arith.constant 0 : i32
    return %arg0, %c0_i32 : i32, i32
  }
}

</mosaic_0001>

<bundles_post_ra>
// kernel: tpu_custom_call.1
= control target key start
LH: loop header
LB: loop body
LE: loop exit
PB: predicated region body
PF: predicated region fallthrough
CT: control target
= control target key end

     0   :  { %11 = vsyncpa [#allocation4], 0  ;;  %s698_s0 = inlined_call_operand.hbm [shape: bf16[2,8,128], index: 0, kind: input, shape index: {}]   ;;  %s699_s1 = inlined_call_operand.vmem [shape: s32[2,1], index: 1, kind: input, shape index: {}]   ;;  %s700_s2 = inlined_call_operand.hbm [shape: bf16[128,128], index: 2, kind: input, shape index: {}]   ;;  %s701_s3 = inlined_call_operand.vmem [shape: f32[1,128], index: 3, kind: input, shape index: {}]   ;;  %s702_s4 = inlined_call_operand.hbm [shape: bf16[128,128], index: 4, kind: input, shape index: {}]   ;;  %s703_s5 = inlined_call_operand.vmem [shape: f32[1,128], index: 5, kind: input, shape index: {}]   ;;  %s704_s6 = inlined_call_operand.hbm [shape: f32[2,128], index: 6, kind: output, shape index: {}]  }
   0x1   :  { %12 = vsyncpa [#allocation7], 0 }
   0x2   :  { %13 = vsyncpa [#allocation5], 0  ;;  %s608_s21 = smov [#allocation6]   ;;  %s609_s23 = smov [#allocation3]  }
   0x3   :  { %s33_s22 = sshll.u32 %s608_s21, 4  ;;  %s19_s24 = sshll.u32 %s609_s23, 4  ;;  %s34_s22 = int_to_ptr.vmem [resolvable:$true] %s33_s22  ;;  %s20_s24 = int_to_ptr.vmem [resolvable:$true] %s19_s24 }
   0x4   :  { %s530_s25 = scalar_lea.vmem %s34_s22, 1024  ;;  %p535_p1 = scmp.lt.s32.totalorder %s34_s22, %s34_s22 }
   0x5   :  { %p531_p0 = scmp.ne.s32.totalorder %s34_s22, %s530_s25  ;;  %p536_p2 = scmp.lt.s32.totalorder %s530_s25, %s530_s25 }
   0x7   :  { %p537_p3 = por %p536_p2, %p535_p1 }
   0x9   :  { %p538_p4 = pnand %p537_p3, %p531_p0 }
   0xb   :  { %541 = shalt.err (!%p538_p4)
}
   0xc   :  { %s610_s26 = smov 64   ;;  %s611_s27 = smov 4  }
   0xd   :  { %39 = dma.hbm_to_vmem [thread:$0]  %s700_s2, 1024, %s34_s22, [#allocation7], %s610_s26, %s610_s26, %s611_s27  }
   0xe   :  { %s550_s30 = scalar_lea.vmem %s20_s24, 128  ;;  %p555_p6 = scmp.lt.s32.totalorder %s20_s24, %s20_s24 }
   0xf   :  { %p551_p5 = scmp.ne.s32.totalorder %s20_s24, %s550_s30  ;;  %p556_p7 = scmp.lt.s32.totalorder %s550_s30, %s550_s30 }
  0x11   :  { %p557_p8 = por %p556_p7, %p555_p6 }
  0x13   :  { %p558_p9 = pnand %p557_p8, %p551_p5 }
  0x15   :  { %561 = shalt.err (!%p558_p9)
}
  0x16   :  { %25 = dma.hbm_to_vmem [thread:$0]  %s698_s0, 128, %s20_s24, [#allocation4], %s610_s26, %s610_s26, %s611_s27  }
  0x17   :  { %s612_s9 = smov [#allocation8]  }
  0x18   :  { %s47_s10 = sshll.u32 %s612_s9, 4  ;;  %s48_s10 = int_to_ptr.vmem [resolvable:$true] %s47_s10 }
  0x19   :  { %s570_s11 = scalar_lea.vmem %s48_s10, 1024  ;;  %p575_p11 = scmp.lt.s32.totalorder %s48_s10, %s48_s10 }
  0x1a   :  { %p571_p10 = scmp.ne.s32.totalorder %s48_s10, %s570_s11  ;;  %p576_p12 = scmp.lt.s32.totalorder %s570_s11, %s570_s11 }
  0x1c   :  { %p577_p13 = por %p576_p12, %p575_p11 }
  0x1e   :  { %p578_p0 = pnand %p577_p13, %p571_p10 }
  0x20   :  { %581 = shalt.err (!%p578_p0)
}
  0x21   :  { %53 = dma.hbm_to_vmem [thread:$0]  %s702_s4, 1024, %s48_s10, [#allocation7], %s610_s26, %s610_s26, %s611_s27  }
  0x22   :  { %602 = dma.done.wait [#allocation4], 128  }
  0x23   :  { %603 = vsyncadd [#allocation4], 4294967168 }
  0x24   :  { %604 = dma.done.wait [#allocation7], 2048  }
  0x25   :  { %605 = vsyncadd [#allocation7], 4294965248  ;;  %v613_v0 = vmov 0.0   ;;  %vm614_vm0 = vmmov 0   ;;  %v615_v1 = vmov 0   ;;  %v503_v2 = vld [vmem:[#allocation6 + $0x38] sm:$0xff]   ;;  %v194_v16 = vlaneseq }
  0x26   :  { %447 = vmatprep.subr.bf16.mxu0 %v613_v0  ;;  %70 = vst [vmem:[#allocation2] sm:$0x3] %v613_v0  ;;  %463 = vmatprep.mubr.msk.bf16.mxu0 %vm614_vm0, %v613_v0  ;;  %v504_v3 = vld [vmem:[#allocation6 + $0x30] sm:$0xff]   ;;  %v505_v4 = vld [vmem:[#allocation6 + $0x28] sm:$0xff]   ;;  %v506_v6 = vld [vmem:[#allocation6 + $0x20] sm:$0xff]   ;;  %vm218_vm6 = vcmask 130048  }
  0x27   :  { %502 = vset.pattern.permute.xlu0 %v615_v1  ;;  %467 = vmatprep.subr.bf16.mxu1 %v613_v0  ;;  %v193_v5 = vld [vmem:[%s699_s1] sm:$0x3]  ;;  %v507_v9 = vld [vmem:[#allocation6 + $0x18] sm:$0xff]   ;;  %v509_v13 = vld [vmem:[#allocation6 + $0x8] sm:$0xff]   ;;  %v197_v17 = vshrl.u32 %v194_v16, 7  ;;  %v195_v20 = vand.u32 127, %v194_v16 }
  0x28   :  { %469 = vmatprep.mubr.msk.bf16.mxu1 %vm614_vm0, %v613_v0  ;;  %448 = vmatpush3.bf16.msra.mxu0 %v503_v2  ;;  %vm202_vm1 = vcmp.gt.s32.totalorder %v193_v5, 0  ;;  %v267_v7 = vcvt.s32.f32 %v193_v5  ;;  %v508_v12 = vld [vmem:[#allocation6 + $0x10] sm:$0xff]   ;;  %v510_v14 = vld [vmem:[#allocation6] sm:$0xff]   ;;  %v511_v15 = vld [vmem:[#allocation3] sm:$0xff]   ;;  %s616_s15 = smov [#allocation9]  }
  0x29   :  { %449 = vmatprep.subr.bf16.mxu0 %v613_v0  ;;  %v203_v8 = vsel %vm202_vm1, %v193_v5, 0  ;;  %v198_v18 = vmul.u32 8, %v197_v17  ;;  %v406_v22 = vld [vmem:[%s701_s3] ss:$0 sm:$0xff]  ;;  %v512_v34 = vld [vmem:[#allocation8 + $0x38] sm:$0xff]   ;;  %v514_v36 = vld [vmem:[#allocation8 + $0x28] sm:$0xff]  }
  0x2a   :  { %vm204_vm2 = vcmp.lt.s32.totalorder %v203_v8, 8  ;;  %v268_v11 = vmax.f32 %v267_v7, 1.0  ;;  %v513_v35 = vld [vmem:[#allocation8 + $0x30] sm:$0xff]   ;;  %v515_v37 = vld [vmem:[#allocation8 + $0x20] sm:$0xff]   ;;  %v516_v38 = vld [vmem:[#allocation8 + $0x18] sm:$0xff]   ;;  %s396_s16 = sshll.u32 %s616_s15, 4  ;;  %s397_s16 = int_to_ptr.vmem [resolvable:$true] %s396_s16 }
  0x2b   :  { %v205_v10 = vsel %vm204_vm2, %v203_v8, 8  ;;  %vm210_vm3 = vcmp.ge.s32.totalorder %v195_v20, %v198_v18  ;;  %v517_v39 = vld [vmem:[#allocation8 + $0x10] sm:$0xff]   ;;  %v518_v40 = vld [vmem:[#allocation8 + $0x8] sm:$0xff]   ;;  %v519_v41 = vld [vmem:[#allocation8] sm:$0xff]   ;;  %s582_s17 = scalar_lea.vmem %s397_s16, 32  ;;  %p587_p2 = scmp.lt.s32.totalorder %s397_s16, %s397_s16 }
  0x2c   :  { %450 = vmatpush3.bf16.msra.mxu0 %v504_v3  ;;  %207 = vperm.xlu0 %502, %v205_v10   ;;  %v418_v53 = vld [vmem:[%s703_s5] ss:$0 sm:$0xff]  ;;  %p583_p1 = scmp.ne.s32.totalorder %s397_s16, %s582_s17  ;;  %p588_p3 = scmp.lt.s32.totalorder %s582_s17, %s582_s17 }
  0x2d   :  { %451 = vmatprep.subr.bf16.mxu0 %v613_v0  ;;  %v216_v43 = vld [vmem:[#allocation2] sm:$0x3] }
  0x2e   :  { %p589_p4 = por %p588_p3, %p587_p2 }
  0x30   :  { %452 = vmatpush3.bf16.msra.mxu0 %v505_v4  ;;  %272 = vperm.xlu0 %502, %v268_v11   ;;  %p590_p5 = pnand %p589_p4, %p583_p1 }
  0x31   :  { %453 = vmatprep.subr.bf16.mxu0 %v613_v0 }
  0x34   :  { %454 = vmatpush3.bf16.msra.mxu0 %v506_v6 }
  0x35   :  { %455 = vmatprep.subr.bf16.mxu0 %v613_v0 }
  0x38   :  { %456 = vmatpush3.bf16.msra.mxu0 %v507_v9 }
  0x39   :  { %457 = vmatprep.subr.bf16.mxu0 %v613_v0 }
  0x3c   :  { %458 = vmatpush3.bf16.msra.mxu0 %v508_v12 }
  0x3d   :  { %459 = vmatprep.subr.bf16.mxu0 %v613_v0 }
  0x40   :  { %460 = vmatpush3.bf16.msra.mxu0 %v509_v13 }
  0x41   :  { %461 = vmatprep.subr.bf16.mxu0 %v613_v0 }
  0x44   :  { %462 = vmatpush3.bf16.msra.mxu0 %v510_v14 }
  0x47   :  { %464 = vmatmul.mubr.bf16.vlgmr.msra.gmra.mxu0 %v511_v15 }
  0xa7   :  { %v208_v19 = vpop.permute.xlu0 %207 }
  0xa8   :  { %v209_v21 = vadd.s32 %v208_v19, %v198_v18 }
  0xaa   :  { %vm211_vm4 = vcmp.lt.s32.totalorder %v195_v20, %v209_v21 }
  0xab   :  { %vm212_vm5 = vmand %vm210_vm3, %vm211_vm4  ;;  %v273_v42 = vpop.permute.xlu0 %272 }
  0xac   :  { %v416_v30 = vsel %vm212_vm5, 1.0, %v613_v0  ;;  %520 = vrcp.f32 %v273_v42 }
  0xad   :  { %v215_v33 = vpack.c.bf16 %v416_v30, %v416_v30 }
  0xb9   :  { %v521_v49 = vpop.eup %520 }
 0x107   :  { %v184_v23 = vpop.f32.mrf.mxu0 }
 0x108   :  { %v185_v25 = vadd.f32 %v406_v22, %v184_v23 }
 0x109   :  { %v465_v24 = vpop.f32.mrf.mxu0 }
 0x10a   :  { %v191_v29 = vmax.f32 %v185_v25, 0.0 }
 0x10b   :  { %v187_v26 = vpop.f32.mrf.mxu0 }
 0x10c   :  { %v188_v27 = vadd.f32 %v406_v22, %v187_v26 }
 0x10d   :  { %v466_v28 = vpop.f32.mrf.mxu0 }
 0x10e   :  { %v192_v31 = vmax.f32 %v188_v27, 0.0 }
 0x110   :  { %v217_v32 = vpack.c.bf16 %v192_v31, %v191_v29 }
 0x112   :  { %468 = vmatpush3.bf16.msra.mxu1 %v217_v32 }
 0x113   :  { %473 = vmatprep.subr.bf16.mxu1 %v613_v0 }
 0x115   :  { %470 = vmatmul.mubr.msk.bf16.vlgmr.msra.gmra.mxu1 %vm218_vm6, %v215_v33 }
 0x116   :  { %474 = vmatpush3.bf16.msra.mxu1 %v512_v34  ;;  %489 = vmatprep.mubr.msk.bf16.mxu1 %vm614_vm0, %v613_v0 }
 0x117   :  { %475 = vmatprep.subr.bf16.mxu1 %v613_v0 }
 0x11a   :  { %476 = vmatpush3.bf16.msra.mxu1 %v513_v35 }
 0x11b   :  { %477 = vmatprep.subr.bf16.mxu1 %v613_v0 }
 0x11e   :  { %478 = vmatpush3.bf16.msra.mxu1 %v514_v36 }
 0x11f   :  { %479 = vmatprep.subr.bf16.mxu1 %v613_v0 }
 0x122   :  { %480 = vmatpush3.bf16.msra.mxu1 %v515_v37 }
 0x123   :  { %481 = vmatprep.subr.bf16.mxu1 %v613_v0 }
 0x126   :  { %482 = vmatpush3.bf16.msra.mxu1 %v516_v38 }
 0x127   :  { %483 = vmatprep.subr.bf16.mxu1 %v613_v0 }
 0x12a   :  { %484 = vmatpush3.bf16.msra.mxu1 %v517_v39 }
 0x12b   :  { %485 = vmatprep.subr.bf16.mxu1 %v613_v0 }
 0x12e   :  { %486 = vmatpush3.bf16.msra.mxu1 %v518_v40 }
 0x12f   :  { %487 = vmatprep.subr.bf16.mxu1 %v613_v0 }
 0x132   :  { %488 = vmatpush3.bf16.msra.mxu1 %v519_v41 }
 0x1d5   :  { %v256_v44 = vpop.f32.mrf.mxu1 }
 0x1d6   :  { %v262_v45 = vadd.f32 %v256_v44, %v216_v43 }
 0x1d7   :  { %v471_v46 = vpop.f32.mrf.mxu1 }
 0x1d8   :  { %263 = vst [vmem:[#allocation2] sm:$0x3] %v262_v45 }
 0x1d9   :  { %v259_v47 = vpop.f32.mrf.mxu1 }
 0x1db   :  { %v472_v48 = vpop.f32.mrf.mxu1 }
 0x1df   :  { %v269_v50 = vld [vmem:[#allocation2] sm:$0x3] }
 0x1e0   :  { %v276_v51 = vmul.f32 %v521_v49, %v269_v50 }
 0x1e2   :  { %v277_v52 = vpack.c.bf16 %v276_v51, %v276_v51 }
 0x1e4   :  { %490 = vmatmul.mubr.bf16.vlgmr.msra.gmra.mxu1 %v277_v52 }
 0x2a4   :  { %v383_v54 = vpop.f32.mrf.mxu1 }
 0x2a5   :  { %v384_v55 = vadd.f32 %v418_v53, %v383_v54 }
 0x2a6   :  { %v491_v56 = vpop.f32.mrf.mxu1 }
 0x2a7   :  { %389 = vst [vmem:[#allocation9] sm:$0x3] %v384_v55 }
 0x2a8   :  { %v386_v57 = vpop.f32.mrf.mxu1 }
 0x2a9   :  { %593 = shalt.err (!%p590_p5)
}
 0x2aa   :  { %399 = dma.vmem_to_hbm [thread:$0]  %s397_s16, 32, %s704_s6, [#allocation5]   ;;  %v492_v58 = vpop.f32.mrf.mxu1 }
 0x2ab   :  { %606 = dma.done.wait [#allocation5], 32  }
 0x2ac   :  { %607 = vsyncadd [#allocation5], 4294967264 }
 0x2ad   :  { %403 = vsyncpa [#allocation4], 1 }
 0x2ae   :  { %404 = vsyncpa [#allocation7], 1 }
 0x2af   :  { %405 = vsyncpa [#allocation5], 1 }

// kernel: tpu_custom_call.1
= control target key start
LH: loop header
LB: loop body
LE: loop exit
PB: predicated region body
PF: predicated region fallthrough
CT: control target
= control target key end

     0   :  { %11 = vsyncpa [#allocation4], 0  ;;  %s698_s0 = inlined_call_operand.hbm [shape: bf16[2,8,128], index: 0, kind: input, shape index: {}]   ;;  %s699_s1 = inlined_call_operand.vmem [shape: s32[2,1], index: 1, kind: input, shape index: {}]   ;;  %s700_s2 = inlined_call_operand.hbm [shape: bf16[128,128], index: 2, kind: input, shape index: {}]   ;;  %s701_s3 = inlined_call_operand.vmem [shape: f32[1,128], index: 3, kind: input, shape index: {}]   ;;  %s702_s4 = inlined_call_operand.hbm [shape: bf16[128,128], index: 4, kind: input, shape index: {}]   ;;  %s703_s5 = inlined_call_operand.vmem [shape: f32[1,128], index: 5, kind: input, shape index: {}]   ;;  %s704_s6 = inlined_call_operand.hbm [shape: f32[2,128], index: 6, kind: output, shape index: {}]  }
   0x1   :  { %12 = vsyncpa [#allocation7], 0 }
   0x2   :  { %13 = vsyncpa [#allocation5], 0  ;;  %s608_s21 = smov [#allocation6]   ;;  %s609_s23 = smov [#allocation3]  }
   0x3   :  { %s33_s22 = sshll.u32 %s608_s21, 4  ;;  %s19_s24 = sshll.u32 %s609_s23, 4  ;;  %s34_s22 = int_to_ptr.vmem [resolvable:$true] %s33_s22  ;;  %s20_s24 = int_to_ptr.vmem [resolvable:$true] %s19_s24 }
   0x4   :  { %s530_s25 = scalar_lea.vmem %s34_s22, 1024  ;;  %p535_p1 = scmp.lt.s32.totalorder %s34_s22, %s34_s22 }
   0x5   :  { %p531_p0 = scmp.ne.s32.totalorder %s34_s22, %s530_s25  ;;  %p536_p2 = scmp.lt.s32.totalorder %s530_s25, %s530_s25 }
   0x7   :  { %p537_p3 = por %p536_p2, %p535_p1 }
   0x9   :  { %p538_p4 = pnand %p537_p3, %p531_p0 }
   0xb   :  { %541 = shalt.err (!%p538_p4)
}
   0xc   :  { %s610_s26 = smov 64   ;;  %s611_s27 = smov 4  }
   0xd   :  { %39 = dma.hbm_to_vmem [thread:$0]  %s700_s2, 1024, %s34_s22, [#allocation7], %s610_s26, %s610_s26, %s611_s27  }
   0xe   :  { %s550_s30 = scalar_lea.vmem %s20_s24, 128  ;;  %p555_p6 = scmp.lt.s32.totalorder %s20_s24, %s20_s24 }
   0xf   :  { %p551_p5 = scmp.ne.s32.totalorder %s20_s24, %s550_s30  ;;  %p556_p7 = scmp.lt.s32.totalorder %s550_s30, %s550_s30 }
  0x11   :  { %p557_p8 = por %p556_p7, %p555_p6 }
  0x13   :  { %p558_p9 = pnand %p557_p8, %p551_p5 }
  0x15   :  { %561 = shalt.err (!%p558_p9)
}
  0x16   :  { %25 = dma.hbm_to_vmem [thread:$0]  %s698_s0, 128, %s20_s24, [#allocation4], %s610_s26, %s610_s26, %s611_s27  }
  0x17   :  { %s612_s9 = smov [#allocation8]  }
  0x18   :  { %s47_s10 = sshll.u32 %s612_s9, 4  ;;  %s48_s10 = int_to_ptr.vmem [resolvable:$true] %s47_s10 }
  0x19   :  { %s570_s11 = scalar_lea.vmem %s48_s10, 1024  ;;  %p575_p11 = scmp.lt.s32.totalorder %s48_s10, %s48_s10 }
  0x1a   :  { %p571_p10 = scmp.ne.s32.totalorder %s48_s10, %s570_s11  ;;  %p576_p12 = scmp.lt.s32.totalorder %s570_s11, %s570_s11 }
  0x1c   :  { %p577_p13 = por %p576_p12, %p575_p11 }
  0x1e   :  { %p578_p0 = pnand %p577_p13, %p571_p10 }
  0x20   :  { %581 = shalt.err (!%p578_p0)
}
  0x21   :  { %53 = dma.hbm_to_vmem [thread:$0]  %s702_s4, 1024, %s48_s10, [#allocation7], %s610_s26, %s610_s26, %s611_s27  }
  0x22   :  { %602 = dma.done.wait [#allocation4], 128  }
  0x23   :  { %603 = vsyncadd [#allocation4], 4294967168 }
  0x24   :  { %604 = dma.done.wait [#allocation7], 2048  }
  0x25   :  { %605 = vsyncadd [#allocation7], 4294965248  ;;  %v613_v0 = vmov 0.0   ;;  %vm614_vm0 = vmmov 0   ;;  %v615_v1 = vmov 0   ;;  %v503_v2 = vld [vmem:[#allocation6 + $0x38] sm:$0xff]   ;;  %v194_v16 = vlaneseq }
  0x26   :  { %447 = vmatprep.subr.bf16.mxu0 %v613_v0  ;;  %70 = vst [vmem:[#allocation2] sm:$0x3] %v613_v0  ;;  %463 = vmatprep.mubr.msk.bf16.mxu0 %vm614_vm0, %v613_v0  ;;  %v504_v3 = vld [vmem:[#allocation6 + $0x30] sm:$0xff]   ;;  %v505_v4 = vld [vmem:[#allocation6 + $0x28] sm:$0xff]   ;;  %v506_v6 = vld [vmem:[#allocation6 + $0x20] sm:$0xff]   ;;  %vm218_vm6 = vcmask 130048  }
  0x27   :  { %502 = vset.pattern.permute.xlu0 %v615_v1  ;;  %467 = vmatprep.subr.bf16.mxu1 %v613_v0  ;;  %v193_v5 = vld [vmem:[%s699_s1] sm:$0x3]  ;;  %v507_v9 = vld [vmem:[#allocation6 + $0x18] sm:$0xff]   ;;  %v509_v13 = vld [vmem:[#allocation6 + $0x8] sm:$0xff]   ;;  %v197_v17 = vshrl.u32 %v194_v16, 7  ;;  %v195_v20 = vand.u32 127, %v194_v16 }
  0x28   :  { %469 = vmatprep.mubr.msk.bf16.mxu1 %vm614_vm0, %v613_v0  ;;  %448 = vmatpush3.bf16.msra.mxu0 %v503_v2  ;;  %vm202_vm1 = vcmp.gt.s32.totalorder %v193_v5, 0  ;;  %v267_v7 = vcvt.s32.f32 %v193_v5  ;;  %v508_v12 = vld [vmem:[#allocation6 + $0x10] sm:$0xff]   ;;  %v510_v14 = vld [vmem:[#allocation6] sm:$0xff]   ;;  %v511_v15 = vld [vmem:[#allocation3] sm:$0xff]   ;;  %s616_s15 = smov [#allocation9]  }
  0x29   :  { %449 = vmatprep.subr.bf16.mxu0 %v613_v0  ;;  %v203_v8 = vsel %vm202_vm1, %v193_v5, 0  ;;  %v198_v18 = vmul.u32 8, %v197_v17  ;;  %v406_v22 = vld [vmem:[%s701_s3] ss:$0 sm:$0xff]  ;;  %v512_v34 = vld [vmem:[#allocation8 + $0x38] sm:$0xff]   ;;  %v514_v36 = vld [vmem:[#allocation8 + $0x28] sm:$0xff]  }
  0x2a   :  { %vm204_vm2 = vcmp.lt.s32.totalorder %v203_v8, 8  ;;  %v268_v11 = vmax.f32 %v267_v7, 1.0  ;;  %v513_v35 = vld [vmem:[#allocation8 + $0x30] sm:$0xff]   ;;  %v515_v37 = vld [vmem:[#allocation8 + $0x20] sm:$0xff]   ;;  %v516_v38 = vld [vmem:[#allocation8 + $0x18] sm:$0xff]   ;;  %s396_s16 = sshll.u32 %s616_s15, 4  ;;  %s397_s16 = int_to_ptr.vmem [resolvable:$true] %s396_s16 }
  0x2b   :  { %v205_v10 = vsel %vm204_vm2, %v203_v8, 8  ;;  %vm210_vm3 = vcmp.ge.s32.totalorder %v195_v20, %v198_v18  ;;  %v517_v39 = vld [vmem:[#allocation8 + $0x10] sm:$0xff]   ;;  %v518_v40 = vld [vmem:[#allocation8 + $0x8] sm:$0xff]   ;;  %v519_v41 = vld [vmem:[#allocation8] sm:$0xff]   ;;  %s582_s17 = scalar_lea.vmem %s397_s16, 32  ;;  %p587_p2 = scmp.lt.s32.totalorder %s397_s16, %s397_s16 }
  0x2c   :  { %450 = vmatpush3.bf16.msra.mxu0 %v504_v3  ;;  %207 = vperm.xlu0 %502, %v205_v10   ;;  %v418_v53 = vld [vmem:[%s703_s5] ss:$0 sm:$0xff]  ;;  %p583_p1 = scmp.ne.s32.totalorder %s397_s16, %s582_s17  ;;  %p588_p3 = scmp.lt.s32.totalorder %s582_s17, %s582_s17 }
  0x2d   :  { %451 = vmatprep.subr.bf16.mxu0 %v613_v0  ;;  %v216_v43 = vld [vmem:[#allocation2] sm:$0x3] }
  0x2e   :  { %p589_p4 = por %p588_p3, %p587_p2 }
  0x30   :  { %452 = vmatpush3.bf16.msra.mxu0 %v505_v4  ;;  %272 = vperm.xlu0 %502, %v268_v11   ;;  %p590_p5 = pnand %p589_p4, %p583_p1 }
  0x31   :  { %453 = vmatprep.subr.bf16.mxu0 %v613_v0 }
  0x34   :  { %454 = vmatpush3.bf16.msra.mxu0 %v506_v6 }
  0x35   :  { %455 = vmatprep.subr.bf16.mxu0 %v613_v0 }
  0x38   :  { %456 = vmatpush3.bf16.msra.mxu0 %v507_v9 }
  0x39   :  { %457 = vmatprep.subr.bf16.mxu0 %v613_v0 }
  0x3c   :  { %458 = vmatpush3.bf16.msra.mxu0 %v508_v12 }
  0x3d   :  { %459 = vmatprep.subr.bf16.mxu0 %v613_v0 }
  0x40   :  { %460 = vmatpush3.bf16.msra.mxu0 %v509_v13 }
  0x41   :  { %461 = vmatprep.subr.bf16.mxu0 %v613_v0 }
  0x44   :  { %462 = vmatpush3.bf16.msra.mxu0 %v510_v14 }
  0x47   :  { %464 = vmatmul.mubr.bf16.vlgmr.msra.gmra.mxu0 %v511_v15 }
  0xa7   :  { %v208_v19 = vpop.permute.xlu0 %207 }
  0xa8   :  { %v209_v21 = vadd.s32 %v208_v19, %v198_v18 }
  0xaa   :  { %vm211_vm4 = vcmp.lt.s32.totalorder %v195_v20, %v209_v21 }
  0xab   :  { %vm212_vm5 = vmand %vm210_vm3, %vm211_vm4  ;;  %v273_v42 = vpop.permute.xlu0 %272 }
  0xac   :  { %v416_v30 = vsel %vm212_vm5, 1.0, %v613_v0  ;;  %520 = vrcp.f32 %v273_v42 }
  0xad   :  { %v215_v33 = vpack.c.bf16 %v416_v30, %v416_v30 }
  0xb9   :  { %v521_v49 = vpop.eup %520 }
 0x107   :  { %v184_v23 = vpop.f32.mrf.mxu0 }
 0x108   :  { %v185_v25 = vadd.f32 %v406_v22, %v184_v23 }
 0x109   :  { %v465_v24 = vpop.f32.mrf.mxu0 }
 0x10a   :  { %v191_v29 = vmax.f32 %v185_v25, 0.0 }
 0x10b   :  { %v187_v26 = vpop.f32.mrf.mxu0 }
 0x10c   :  { %v188_v27 = vadd.f32 %v406_v22, %v187_v26 }
 0x10d   :  { %v466_v28 = vpop.f32.mrf.mxu0 }
 0x10e   :  { %v192_v31 = vmax.f32 %v188_v27, 0.0 }
 0x110   :  { %v217_v32 = vpack.c.bf16 %v192_v31, %v191_v29 }
 0x112   :  { %468 = vmatpush3.bf16.msra.mxu1 %v217_v32 }
 0x113   :  { %473 = vmatprep.subr.bf16.mxu1 %v613_v0 }
 0x115   :  { %470 = vmatmul.mubr.msk.bf16.vlgmr.msra.gmra.mxu1 %vm218_vm6, %v215_v33 }
 0x116   :  { %474 = vmatpush3.bf16.msra.mxu1 %v512_v34  ;;  %489 = vmatprep.mubr.msk.bf16.mxu1 %vm614_vm0, %v613_v0 }
 0x117   :  { %475 = vmatprep.subr.bf16.mxu1 %v613_v0 }
 0x11a   :  { %476 = vmatpush3.bf16.msra.mxu1 %v513_v35 }
 0x11b   :  { %477 = vmatprep.subr.bf16.mxu1 %v613_v0 }
 0x11e   :  { %478 = vmatpush3.bf16.msra.mxu1 %v514_v36 }
 0x11f   :  { %479 = vmatprep.subr.bf16.mxu1 %v613_v0 }
 0x122   :  { %480 = vmatpush3.bf16.msra.mxu1 %v515_v37 }
 0x123   :  { %481 = vmatprep.subr.bf16.mxu1 %v613_v0 }
 0x126   :  { %482 = vmatpush3.bf16.msra.mxu1 %v516_v38 }
 0x127   :  { %483 = vmatprep.subr.bf16.mxu1 %v613_v0 }
 0x12a   :  { %484 = vmatpush3.bf16.msra.mxu1 %v517_v39 }
 0x12b   :  { %485 = vmatprep.subr.bf16.mxu1 %v613_v0 }
 0x12e   :  { %486 = vmatpush3.bf16.msra.mxu1 %v518_v40 }
 0x12f   :  { %487 = vmatprep.subr.bf16.mxu1 %v613_v0 }
 0x132   :  { %488 = vmatpush3.bf16.msra.mxu1 %v519_v41 }
 0x1d5   :  { %v256_v44 = vpop.f32.mrf.mxu1 }
 0x1d6   :  { %v262_v45 = vadd.f32 %v256_v44, %v216_v43 }
 0x1d7   :  { %v471_v46 = vpop.f32.mrf.mxu1 }
 0x1d8   :  { %263 = vst [vmem:[#allocation2] sm:$0x3] %v262_v45 }
 0x1d9   :  { %v259_v47 = vpop.f32.mrf.mxu1 }
 0x1db   :  { %v472_v48 = vpop.f32.mrf.mxu1 }
 0x1df   :  { %v269_v50 = vld [vmem:[#allocation2] sm:$0x3] }
 0x1e0   :  { %v276_v51 = vmul.f32 %v521_v49, %v269_v50 }
 0x1e2   :  { %v277_v52 = vpack.c.bf16 %v276_v51, %v276_v51 }
 0x1e4   :  { %490 = vmatmul.mubr.bf16.vlgmr.msra.gmra.mxu1 %v277_v52 }
 0x2a4   :  { %v383_v54 = vpop.f32.mrf.mxu1 }
 0x2a5   :  { %v384_v55 = vadd.f32 %v418_v53, %v383_v54 }
 0x2a6   :  { %v491_v56 = vpop.f32.mrf.mxu1 }
 0x2a7   :  { %389 = vst [vmem:[#allocation9] sm:$0x3] %v384_v55 }
 0x2a8   :  { %v386_v57 = vpop.f32.mrf.mxu1 }
 0x2a9   :  { %593 = shalt.err (!%p590_p5)
}
 0x2aa   :  { %399 = dma.vmem_to_hbm [thread:$0]  %s397_s16, 32, %s704_s6, [#allocation5]   ;;  %v492_v58 = vpop.f32.mrf.mxu1 }
 0x2ab   :  { %606 = dma.done.wait [#allocation5], 32  }
 0x2ac   :  { %607 = vsyncadd [#allocation5], 4294967264 }
 0x2ad   :  { %403 = vsyncpa [#allocation4], 1 }
 0x2ae   :  { %404 = vsyncpa [#allocation7], 1 }
 0x2af   :  { %405 = vsyncpa [#allocation5], 1 }

</bundles_post_ra>
